<compile_context>
chip_gen: v7x
topology: tpu7x:2x2x1
jax: 0.10.0
libtpu: 0.0.40
codegen_flags: <defaults>
</compile_context>

<pallas_src>
import jax
import jax.numpy as jnp
from jax.experimental import pallas as pl
from jax.experimental.pallas import tpu as pltpu

LANE = 128                       # lane width of the folded spatial layout
X_TILE_BYTES = 4 * 1024 * 1024   # target bytes of x per grid step (~2048 rows @ C=4/f32)


def _round_up(a, b):
    return -(-a // b) * b


def _pa_kernel(w_ref, b_ref, x_ref, o_ref):
    # w_ref: (C*C,) f32 SMEM (scalar-prefetched), row-major (out_ch, in_ch) conv weight
    # b_ref: (C,)   f32 SMEM (scalar-prefetched) conv bias
    # x_ref/o_ref: folded tile (1, C, TR, 128)  or  ragged tile (1, C, THW)
    C = x_ref.shape[1]
    folded = len(x_ref.shape) == 4

    def load_ch(c):
        # Channel-c spatial slab as a rank-2 array (lane-dense).
        if folded:
            return x_ref[0, c, :, :]
        return x_ref[0, pl.ds(c, 1), :]

    def store_ch(c, val):
        if folded:
            o_ref[0, c, :, :] = val
        else:
            o_ref[0, pl.ds(c, 1), :] = val

    for o in range(C):                                 # static unroll over out channels
        z = load_ch(0) * w_ref[o * C + 0]              # scalar-broadcast VPU FMAs
        for i in range(1, C):
            z = z + load_ch(i) * w_ref[o * C + i]
        z = z + b_ref[o]
        # sigmoid(z) = 1 / (1 + exp(-z)): exp + exact reciprocal both ride the EUP
        # slot, leaving VALU free (matters on v7x where HBM leaves little slack).
        y = pl.reciprocal(1.0 + jnp.exp(-z))
        store_ch(o, (load_ch(o) * y).astype(o_ref.dtype))


def pa_forward(x_nchw, weight, bias):
    """Pixel-attention forward.

    x_nchw: (N, C, H, W) float32
    weight: (C, C, 1, 1) float32   (PyTorch Conv2d weight layout: out, in, 1, 1)
    bias:   (C,)         float32
    """
    N, C, H, W = x_nchw.shape
    HW = H * W
    itemsize = jnp.dtype(x_nchw.dtype).itemsize

    w_flat = weight.reshape(C * C).astype(jnp.float32)   # [o*C + i] = weight[o, i, 0, 0]
    b_flat = bias.reshape(C).astype(jnp.float32)

    if HW % LANE == 0:
        # Fast path: fold the spatial stream into (rows, 128) -- free reshape, no pad.
        rows = HW // LANE
        x_arr = x_nchw.reshape(N, C, rows, LANE)
        max_rows = max(8, (X_TILE_BYTES // (C * LANE * itemsize)) // 8 * 8)
        if rows < 32:
            tile_r = rows                                    # full extent (tiny input)
        else:
            # >=4 spatial blocks (multiple-of-8 rows) so both v7x TCs + the DMA
            # pipeline get work even for N=1; partial last block is allowed.
            tile_r = min(max_rows, max(8, _round_up(pl.cdiv(rows, 4), 8)))
        grid = (N, pl.cdiv(rows, tile_r))
        block = (1, C, tile_r, LANE)
        idx_map = lambda n, t, w_s, b_s: (n, 0, t, 0)
        out_shape = jax.ShapeDtypeStruct((N, C, rows, LANE), x_nchw.dtype)
    else:
        # Ragged spatial size: run on the (N, C, HW) view directly. The last block is
        # partial (OOB output writes dropped; OOB input garbage is harmless because the
        # op is purely elementwise) -- no wrapper-side pad or slice HBM passes.
        x_arr = x_nchw.reshape(N, C, HW)
        max_hw = max(LANE, (X_TILE_BYTES // (C * itemsize)) // LANE * LANE)
        if HW < 4 * LANE:
            tile_hw = HW                                     # full extent (tiny input)
        else:
            tile_hw = min(max_hw, max(LANE, _round_up(pl.cdiv(HW, 4), LANE)))
        grid = (N, pl.cdiv(HW, tile_hw))
        block = (1, C, tile_hw)
        idx_map = lambda n, t, w_s, b_s: (n, 0, t)
        out_shape = jax.ShapeDtypeStruct((N, C, HW), x_nchw.dtype)

    cost = pl.CostEstimate(
        flops=2 * N * HW * C * (C + 1),                     # conv MACs + bias + gate mul
        transcendentals=N * C * HW,                         # one exp per output element
        bytes_accessed=2 * N * C * HW * itemsize + (C * C + C) * 4,
    )

    out = pl.pallas_call(
        _pa_kernel,
        out_shape=out_shape,
        grid_spec=pltpu.PrefetchScalarGridSpec(
            num_scalar_prefetch=2,                          # weight, bias -> SMEM once
            grid=grid,
            # TODO(synk): if xprof shows exposed DMA on v7x, add
            #             pipeline_mode=pl.Buffered(3) to the x BlockSpec.
            in_specs=[pl.BlockSpec(block, idx_map)],
            out_specs=pl.BlockSpec(block, idx_map),
        ),
        compiler_params=pltpu.CompilerParams(
            dimension_semantics=("parallel", "parallel"),
            vmem_limit_bytes=40 * 1024 * 1024,              # ~16 MiB double-buffered tiles
        ),
        cost_estimate=cost,
    )(w_flat, b_flat, x_arr)

    return out.reshape(N, C, H, W)


def pa_reference(x_nchw, weight, bias):
    """Pure-JAX reference matching PyTorch semantics."""
    N, C, H, W = x_nchw.shape
    w = weight.reshape(C, C)  # (out, in)
    y = jnp.einsum('nchw,oc->nohw', x_nchw, w) + bias.reshape(1, C, 1, 1)
    y = jax.nn.sigmoid(y)
    return x_nchw * y


if __name__ == "__main__":
    key = jax.random.PRNGKey(0)
    k_x, k_w, k_b = jax.random.split(key, 3)

    N, C, H, W = 2, 4, 16, 16  # nf = 4
    x = jax.random.normal(k_x, (N, C, H, W), dtype=jnp.float32)
    weight = jax.random.normal(k_w, (C, C, 1, 1), dtype=jnp.float32) * 0.1
    bias = jax.random.normal(k_b, (C,), dtype=jnp.float32) * 0.1

    out = pa_forward(x, weight, bias)
    out = jax.block_until_ready(out)

    ref = pa_reference(x, weight, bias)
    assert out.shape == (N, C, H, W)
    assert jnp.allclose(out, ref, atol=1e-5, rtol=1e-5), "mismatch vs reference"

    print("KERNEL_OK")
</pallas_src>

<mosaic_0001>
module attributes {stable_mosaic.version = 11 : i64} {
  func.func @_pa_kernel(%arg0: i32, %arg1: i32, %arg2: memref<16xf32, #tpu.memory_space<smem>>, %arg3: memref<4xf32, #tpu.memory_space<smem>>, %arg4: memref<1x4x2x128xf32, #tpu.memory_space<vmem>>, %arg5: memref<1x4x2x128xf32, #tpu.memory_space<vmem>>) attributes {dimension_semantics = [#tpu.dimension_semantics<parallel>, #tpu.dimension_semantics<parallel>], iteration_bounds = array<i64: 2, 1>, scalar_prefetch = 2 : i64, scratch_operands = 0 : i64, tpu.core_type = #tpu.core_type<tc>, window_params = [{transform_indices = @transform_0, window_bounds = array<i64: 1, 4, 2, 128>}, {transform_indices = @transform_1, window_bounds = array<i64: 1, 4, 2, 128>}]} {
    %c0 = arith.constant 0 : index
    %c0_0 = arith.constant 0 : index
    %c0_1 = arith.constant 0 : index
    %c0_2 = arith.constant 0 : index
    %0 = vector.load %arg4[%c0, %c0_0, %c0_1, %c0_2] : memref<1x4x2x128xf32, #tpu.memory_space<vmem>>, vector<1x1x2x128xf32>
    %1 = vector.shape_cast %0 : vector<1x1x2x128xf32> to vector<2x128xf32>
    %c0_3 = arith.constant 0 : index
    %2 = memref.load %arg2[%c0_3] : memref<16xf32, #tpu.memory_space<smem>>
    %3 = vector.broadcast %2 : f32 to vector<2x128xf32>
    %4 = arith.mulf %1, %3 : vector<2x128xf32>
    %c0_4 = arith.constant 0 : index
    %c1 = arith.constant 1 : index
    %c0_5 = arith.constant 0 : index
    %c0_6 = arith.constant 0 : index
    %5 = vector.load %arg4[%c0_4, %c1, %c0_5, %c0_6] : memref<1x4x2x128xf32, #tpu.memory_space<vmem>>, vector<1x1x2x128xf32>
    %6 = vector.shape_cast %5 : vector<1x1x2x128xf32> to vector<2x128xf32>
    %c1_7 = arith.constant 1 : index
    %7 = memref.load %arg2[%c1_7] : memref<16xf32, #tpu.memory_space<smem>>
    %8 = vector.broadcast %7 : f32 to vector<2x128xf32>
    %9 = arith.mulf %6, %8 : vector<2x128xf32>
    %10 = arith.addf %4, %9 : vector<2x128xf32>
    %c0_8 = arith.constant 0 : index
    %c2 = arith.constant 2 : index
    %c0_9 = arith.constant 0 : index
    %c0_10 = arith.constant 0 : index
    %11 = vector.load %arg4[%c0_8, %c2, %c0_9, %c0_10] : memref<1x4x2x128xf32, #tpu.memory_space<vmem>>, vector<1x1x2x128xf32>
    %12 = vector.shape_cast %11 : vector<1x1x2x128xf32> to vector<2x128xf32>
    %c2_11 = arith.constant 2 : index
    %13 = memref.load %arg2[%c2_11] : memref<16xf32, #tpu.memory_space<smem>>
    %14 = vector.broadcast %13 : f32 to vector<2x128xf32>
    %15 = arith.mulf %12, %14 : vector<2x128xf32>
    %16 = arith.addf %10, %15 : vector<2x128xf32>
    %c0_12 = arith.constant 0 : index
    %c3 = arith.constant 3 : index
    %c0_13 = arith.constant 0 : index
    %c0_14 = arith.constant 0 : index
    %17 = vector.load %arg4[%c0_12, %c3, %c0_13, %c0_14] : memref<1x4x2x128xf32, #tpu.memory_space<vmem>>, vector<1x1x2x128xf32>
    %18 = vector.shape_cast %17 : vector<1x1x2x128xf32> to vector<2x128xf32>
    %c3_15 = arith.constant 3 : index
    %19 = memref.load %arg2[%c3_15] : memref<16xf32, #tpu.memory_space<smem>>
    %20 = vector.broadcast %19 : f32 to vector<2x128xf32>
    %21 = arith.mulf %18, %20 : vector<2x128xf32>
    %22 = arith.addf %16, %21 : vector<2x128xf32>
    %c0_16 = arith.constant 0 : index
    %23 = memref.load %arg3[%c0_16] : memref<4xf32, #tpu.memory_space<smem>>
    %24 = vector.broadcast %23 : f32 to vector<2x128xf32>
    %25 = arith.addf %22, %24 : vector<2x128xf32>
    %cst = arith.constant 0.000000e+00 : f32
    %26 = vector.broadcast %cst : f32 to vector<2x128xf32>
    %27 = arith.subf %26, %25 : vector<2x128xf32>
    %28 = math.exp %27 : vector<2x128xf32>
    %cst_17 = arith.constant 1.000000e+00 : f32
    %29 = vector.broadcast %cst_17 : f32 to vector<2x128xf32>
    %30 = arith.addf %29, %28 : vector<2x128xf32>
    %31 = tpu.reciprocal %30 : vector<2x128xf32> -> vector<2x128xf32>
    %c0_18 = arith.constant 0 : index
    %c0_19 = arith.constant 0 : index
    %c0_20 = arith.constant 0 : index
    %c0_21 = arith.constant 0 : index
    %32 = vector.load %arg4[%c0_18, %c0_19, %c0_20, %c0_21] : memref<1x4x2x128xf32, #tpu.memory_space<vmem>>, vector<1x1x2x128xf32>
    %33 = vector.shape_cast %32 : vector<1x1x2x128xf32> to vector<2x128xf32>
    %34 = arith.mulf %33, %31 : vector<2x128xf32>
    %c0_22 = arith.constant 0 : index
    %c0_23 = arith.constant 0 : index
    %c0_24 = arith.constant 0 : index
    %c0_25 = arith.constant 0 : index
    %35 = vector.load %arg5[%c0_22, %c0_23, %c0_24, %c0_25] : memref<1x4x2x128xf32, #tpu.memory_space<vmem>>, vector<1x1x2x128xf32>
    %36 = vector.shape_cast %35 : vector<1x1x2x128xf32> to vector<2x128xf32>
    %37 = vector.shape_cast %34 : vector<2x128xf32> to vector<1x1x2x128xf32>
    tpu.vector_store %arg5[%c0_22, %c0_23, %c0_24, %c0_25], %37 {strides = array<i32>} : memref<1x4x2x128xf32, #tpu.memory_space<vmem>>, vector<1x1x2x128xf32>,
    %c0_26 = arith.constant 0 : index
    %c0_27 = arith.constant 0 : index
    %c0_28 = arith.constant 0 : index
    %c0_29 = arith.constant 0 : index
    %38 = vector.load %arg4[%c0_26, %c0_27, %c0_28, %c0_29] : memref<1x4x2x128xf32, #tpu.memory_space<vmem>>, vector<1x1x2x128xf32>
    %39 = vector.shape_cast %38 : vector<1x1x2x128xf32> to vector<2x128xf32>
    %c4 = arith.constant 4 : index
    %40 = memref.load %arg2[%c4] : memref<16xf32, #tpu.memory_space<smem>>
    %41 = vector.broadcast %40 : f32 to vector<2x128xf32>
    %42 = arith.mulf %39, %41 : vector<2x128xf32>
    %c0_30 = arith.constant 0 : index
    %c1_31 = arith.constant 1 : index
    %c0_32 = arith.constant 0 : index
    %c0_33 = arith.constant 0 : index
    %43 = vector.load %arg4[%c0_30, %c1_31, %c0_32, %c0_33] : memref<1x4x2x128xf32, #tpu.memory_space<vmem>>, vector<1x1x2x128xf32>
    %44 = vector.shape_cast %43 : vector<1x1x2x128xf32> to vector<2x128xf32>
    %c5 = arith.constant 5 : index
    %45 = memref.load %arg2[%c5] : memref<16xf32, #tpu.memory_space<smem>>
    %46 = vector.broadcast %45 : f32 to vector<2x128xf32>
    %47 = arith.mulf %44, %46 : vector<2x128xf32>
    %48 = arith.addf %42, %47 : vector<2x128xf32>
    %c0_34 = arith.constant 0 : index
    %c2_35 = arith.constant 2 : index
    %c0_36 = arith.constant 0 : index
    %c0_37 = arith.constant 0 : index
    %49 = vector.load %arg4[%c0_34, %c2_35, %c0_36, %c0_37] : memref<1x4x2x128xf32, #tpu.memory_space<vmem>>, vector<1x1x2x128xf32>
    %50 = vector.shape_cast %49 : vector<1x1x2x128xf32> to vector<2x128xf32>
    %c6 = arith.constant 6 : index
    %51 = memref.load %arg2[%c6] : memref<16xf32, #tpu.memory_space<smem>>
    %52 = vector.broadcast %51 : f32 to vector<2x128xf32>
    %53 = arith.mulf %50, %52 : vector<2x128xf32>
    %54 = arith.addf %48, %53 : vector<2x128xf32>
    %c0_38 = arith.constant 0 : index
    %c3_39 = arith.constant 3 : index
    %c0_40 = arith.constant 0 : index
    %c0_41 = arith.constant 0 : index
    %55 = vector.load %arg4[%c0_38, %c3_39, %c0_40, %c0_41] : memref<1x4x2x128xf32, #tpu.memory_space<vmem>>, vector<1x1x2x128xf32>
    %56 = vector.shape_cast %55 : vector<1x1x2x128xf32> to vector<2x128xf32>
    %c7 = arith.constant 7 : index
    %57 = memref.load %arg2[%c7] : memref<16xf32, #tpu.memory_space<smem>>
    %58 = vector.broadcast %57 : f32 to vector<2x128xf32>
    %59 = arith.mulf %56, %58 : vector<2x128xf32>
    %60 = arith.addf %54, %59 : vector<2x128xf32>
    %c1_42 = arith.constant 1 : index
    %61 = memref.load %arg3[%c1_42] : memref<4xf32, #tpu.memory_space<smem>>
    %62 = vector.broadcast %61 : f32 to vector<2x128xf32>
    %63 = arith.addf %60, %62 : vector<2x128xf32>
    %cst_43 = arith.constant 0.000000e+00 : f32
    %64 = vector.broadcast %cst_43 : f32 to vector<2x128xf32>
    %65 = arith.subf %64, %63 : vector<2x128xf32>
    %66 = math.exp %65 : vector<2x128xf32>
    %cst_44 = arith.constant 1.000000e+00 : f32
    %67 = vector.broadcast %cst_44 : f32 to vector<2x128xf32>
    %68 = arith.addf %67, %66 : vector<2x128xf32>
    %69 = tpu.reciprocal %68 : vector<2x128xf32> -> vector<2x128xf32>
    %c0_45 = arith.constant 0 : index
    %c1_46 = arith.constant 1 : index
    %c0_47 = arith.constant 0 : index
    %c0_48 = arith.constant 0 : index
    %70 = vector.load %arg4[%c0_45, %c1_46, %c0_47, %c0_48] : memref<1x4x2x128xf32, #tpu.memory_space<vmem>>, vector<1x1x2x128xf32>
    %71 = vector.shape_cast %70 : vector<1x1x2x128xf32> to vector<2x128xf32>
    %72 = arith.mulf %71, %69 : vector<2x128xf32>
    %c0_49 = arith.constant 0 : index
    %c1_50 = arith.constant 1 : index
    %c0_51 = arith.constant 0 : index
    %c0_52 = arith.constant 0 : index
    %73 = vector.load %arg5[%c0_49, %c1_50, %c0_51, %c0_52] : memref<1x4x2x128xf32, #tpu.memory_space<vmem>>, vector<1x1x2x128xf32>
    %74 = vector.shape_cast %73 : vector<1x1x2x128xf32> to vector<2x128xf32>
    %75 = vector.shape_cast %72 : vector<2x128xf32> to vector<1x1x2x128xf32>
    tpu.vector_store %arg5[%c0_49, %c1_50, %c0_51, %c0_52], %75 {strides = array<i32>} : memref<1x4x2x128xf32, #tpu.memory_space<vmem>>, vector<1x1x2x128xf32>,
    %c0_53 = arith.constant 0 : index
    %c0_54 = arith.constant 0 : index
    %c0_55 = arith.constant 0 : index
    %c0_56 = arith.constant 0 : index
    %76 = vector.load %arg4[%c0_53, %c0_54, %c0_55, %c0_56] : memref<1x4x2x128xf32, #tpu.memory_space<vmem>>, vector<1x1x2x128xf32>
    %77 = vector.shape_cast %76 : vector<1x1x2x128xf32> to vector<2x128xf32>
    %c8 = arith.constant 8 : index
    %78 = memref.load %arg2[%c8] : memref<16xf32, #tpu.memory_space<smem>>
    %79 = vector.broadcast %78 : f32 to vector<2x128xf32>
    %80 = arith.mulf %77, %79 : vector<2x128xf32>
    %c0_57 = arith.constant 0 : index
    %c1_58 = arith.constant 1 : index
    %c0_59 = arith.constant 0 : index
    %c0_60 = arith.constant 0 : index
    %81 = vector.load %arg4[%c0_57, %c1_58, %c0_59, %c0_60] : memref<1x4x2x128xf32, #tpu.memory_space<vmem>>, vector<1x1x2x128xf32>
    %82 = vector.shape_cast %81 : vector<1x1x2x128xf32> to vector<2x128xf32>
    %c9 = arith.constant 9 : index
    %83 = memref.load %arg2[%c9] : memref<16xf32, #tpu.memory_space<smem>>
    %84 = vector.broadcast %83 : f32 to vector<2x128xf32>
    %85 = arith.mulf %82, %84 : vector<2x128xf32>
    %86 = arith.addf %80, %85 : vector<2x128xf32>
    %c0_61 = arith.constant 0 : index
    %c2_62 = arith.constant 2 : index
    %c0_63 = arith.constant 0 : index
    %c0_64 = arith.constant 0 : index
    %87 = vector.load %arg4[%c0_61, %c2_62, %c0_63, %c0_64] : memref<1x4x2x128xf32, #tpu.memory_space<vmem>>, vector<1x1x2x128xf32>
    %88 = vector.shape_cast %87 : vector<1x1x2x128xf32> to vector<2x128xf32>
    %c10 = arith.constant 10 : index
    %89 = memref.load %arg2[%c10] : memref<16xf32, #tpu.memory_space<smem>>
    %90 = vector.broadcast %89 : f32 to vector<2x128xf32>
    %91 = arith.mulf %88, %90 : vector<2x128xf32>
    %92 = arith.addf %86, %91 : vector<2x128xf32>
    %c0_65 = arith.constant 0 : index
    %c3_66 = arith.constant 3 : index
    %c0_67 = arith.constant 0 : index
    %c0_68 = arith.constant 0 : index
    %93 = vector.load %arg4[%c0_65, %c3_66, %c0_67, %c0_68] : memref<1x4x2x128xf32, #tpu.memory_space<vmem>>, vector<1x1x2x128xf32>
    %94 = vector.shape_cast %93 : vector<1x1x2x128xf32> to vector<2x128xf32>
    %c11 = arith.constant 11 : index
    %95 = memref.load %arg2[%c11] : memref<16xf32, #tpu.memory_space<smem>>
    %96 = vector.broadcast %95 : f32 to vector<2x128xf32>
    %97 = arith.mulf %94, %96 : vector<2x128xf32>
    %98 = arith.addf %92, %97 : vector<2x128xf32>
    %c2_69 = arith.constant 2 : index
    %99 = memref.load %arg3[%c2_69] : memref<4xf32, #tpu.memory_space<smem>>
    %100 = vector.broadcast %99 : f32 to vector<2x128xf32>
    %101 = arith.addf %98, %100 : vector<2x128xf32>
    %cst_70 = arith.constant 0.000000e+00 : f32
    %102 = vector.broadcast %cst_70 : f32 to vector<2x128xf32>
    %103 = arith.subf %102, %101 : vector<2x128xf32>
    %104 = math.exp %103 : vector<2x128xf32>
    %cst_71 = arith.constant 1.000000e+00 : f32
    %105 = vector.broadcast %cst_71 : f32 to vector<2x128xf32>
    %106 = arith.addf %105, %104 : vector<2x128xf32>
    %107 = tpu.reciprocal %106 : vector<2x128xf32> -> vector<2x128xf32>
    %c0_72 = arith.constant 0 : index
    %c2_73 = arith.constant 2 : index
    %c0_74 = arith.constant 0 : index
    %c0_75 = arith.constant 0 : index
    %108 = vector.load %arg4[%c0_72, %c2_73, %c0_74, %c0_75] : memref<1x4x2x128xf32, #tpu.memory_space<vmem>>, vector<1x1x2x128xf32>
    %109 = vector.shape_cast %108 : vector<1x1x2x128xf32> to vector<2x128xf32>
    %110 = arith.mulf %109, %107 : vector<2x128xf32>
    %c0_76 = arith.constant 0 : index
    %c2_77 = arith.constant 2 : index
    %c0_78 = arith.constant 0 : index
    %c0_79 = arith.constant 0 : index
    %111 = vector.load %arg5[%c0_76, %c2_77, %c0_78, %c0_79] : memref<1x4x2x128xf32, #tpu.memory_space<vmem>>, vector<1x1x2x128xf32>
    %112 = vector.shape_cast %111 : vector<1x1x2x128xf32> to vector<2x128xf32>
    %113 = vector.shape_cast %110 : vector<2x128xf32> to vector<1x1x2x128xf32>
    tpu.vector_store %arg5[%c0_76, %c2_77, %c0_78, %c0_79], %113 {strides = array<i32>} : memref<1x4x2x128xf32, #tpu.memory_space<vmem>>, vector<1x1x2x128xf32>,
    %c0_80 = arith.constant 0 : index
    %c0_81 = arith.constant 0 : index
    %c0_82 = arith.constant 0 : index
    %c0_83 = arith.constant 0 : index
    %114 = vector.load %arg4[%c0_80, %c0_81, %c0_82, %c0_83] : memref<1x4x2x128xf32, #tpu.memory_space<vmem>>, vector<1x1x2x128xf32>
    %115 = vector.shape_cast %114 : vector<1x1x2x128xf32> to vector<2x128xf32>
    %c12 = arith.constant 12 : index
    %116 = memref.load %arg2[%c12] : memref<16xf32, #tpu.memory_space<smem>>
    %117 = vector.broadcast %116 : f32 to vector<2x128xf32>
    %118 = arith.mulf %115, %117 : vector<2x128xf32>
    %c0_84 = arith.constant 0 : index
    %c1_85 = arith.constant 1 : index
    %c0_86 = arith.constant 0 : index
    %c0_87 = arith.constant 0 : index
    %119 = vector.load %arg4[%c0_84, %c1_85, %c0_86, %c0_87] : memref<1x4x2x128xf32, #tpu.memory_space<vmem>>, vector<1x1x2x128xf32>
    %120 = vector.shape_cast %119 : vector<1x1x2x128xf32> to vector<2x128xf32>
    %c13 = arith.constant 13 : index
    %121 = memref.load %arg2[%c13] : memref<16xf32, #tpu.memory_space<smem>>
    %122 = vector.broadcast %121 : f32 to vector<2x128xf32>
    %123 = arith.mulf %120, %122 : vector<2x128xf32>
    %124 = arith.addf %118, %123 : vector<2x128xf32>
    %c0_88 = arith.constant 0 : index
    %c2_89 = arith.constant 2 : index
    %c0_90 = arith.constant 0 : index
    %c0_91 = arith.constant 0 : index
    %125 = vector.load %arg4[%c0_88, %c2_89, %c0_90, %c0_91] : memref<1x4x2x128xf32, #tpu.memory_space<vmem>>, vector<1x1x2x128xf32>
    %126 = vector.shape_cast %125 : vector<1x1x2x128xf32> to vector<2x128xf32>
    %c14 = arith.constant 14 : index
    %127 = memref.load %arg2[%c14] : memref<16xf32, #tpu.memory_space<smem>>
    %128 = vector.broadcast %127 : f32 to vector<2x128xf32>
    %129 = arith.mulf %126, %128 : vector<2x128xf32>
    %130 = arith.addf %124, %129 : vector<2x128xf32>
    %c0_92 = arith.constant 0 : index
    %c3_93 = arith.constant 3 : index
    %c0_94 = arith.constant 0 : index
    %c0_95 = arith.constant 0 : index
    %131 = vector.load %arg4[%c0_92, %c3_93, %c0_94, %c0_95] : memref<1x4x2x128xf32, #tpu.memory_space<vmem>>, vector<1x1x2x128xf32>
    %132 = vector.shape_cast %131 : vector<1x1x2x128xf32> to vector<2x128xf32>
    %c15 = arith.constant 15 : index
    %133 = memref.load %arg2[%c15] : memref<16xf32, #tpu.memory_space<smem>>
    %134 = vector.broadcast %133 : f32 to vector<2x128xf32>
    %135 = arith.mulf %132, %134 : vector<2x128xf32>
    %136 = arith.addf %130, %135 : vector<2x128xf32>
    %c3_96 = arith.constant 3 : index
    %137 = memref.load %arg3[%c3_96] : memref<4xf32, #tpu.memory_space<smem>>
    %138 = vector.broadcast %137 : f32 to vector<2x128xf32>
    %139 = arith.addf %136, %138 : vector<2x128xf32>
    %cst_97 = arith.constant 0.000000e+00 : f32
    %140 = vector.broadcast %cst_97 : f32 to vector<2x128xf32>
    %141 = arith.subf %140, %139 : vector<2x128xf32>
    %142 = math.exp %141 : vector<2x128xf32>
    %cst_98 = arith.constant 1.000000e+00 : f32
    %143 = vector.broadcast %cst_98 : f32 to vector<2x128xf32>
    %144 = arith.addf %143, %142 : vector<2x128xf32>
    %145 = tpu.reciprocal %144 : vector<2x128xf32> -> vector<2x128xf32>
    %c0_99 = arith.constant 0 : index
    %c3_100 = arith.constant 3 : index
    %c0_101 = arith.constant 0 : index
    %c0_102 = arith.constant 0 : index
    %146 = vector.load %arg4[%c0_99, %c3_100, %c0_101, %c0_102] : memref<1x4x2x128xf32, #tpu.memory_space<vmem>>, vector<1x1x2x128xf32>
    %147 = vector.shape_cast %146 : vector<1x1x2x128xf32> to vector<2x128xf32>
    %148 = arith.mulf %147, %145 : vector<2x128xf32>
    %c0_103 = arith.constant 0 : index
    %c3_104 = arith.constant 3 : index
    %c0_105 = arith.constant 0 : index
    %c0_106 = arith.constant 0 : index
    %149 = vector.load %arg5[%c0_103, %c3_104, %c0_105, %c0_106] : memref<1x4x2x128xf32, #tpu.memory_space<vmem>>, vector<1x1x2x128xf32>
    %150 = vector.shape_cast %149 : vector<1x1x2x128xf32> to vector<2x128xf32>
    %151 = vector.shape_cast %148 : vector<2x128xf32> to vector<1x1x2x128xf32>
    tpu.vector_store %arg5[%c0_103, %c3_104, %c0_105, %c0_106], %151 {strides = array<i32>} : memref<1x4x2x128xf32, #tpu.memory_space<vmem>>, vector<1x1x2x128xf32>,
    return
  }
  func.func @transform_0(%arg0: i32, %arg1: i32, %arg2: memref<16xf32, #tpu.memory_space<smem>>, %arg3: memref<4xf32, #tpu.memory_space<smem>>) -> (i32, i32, i32, i32) {
    %c0_i32 = arith.constant 0 : i32
    %c0_i32_0 = arith.constant 0 : i32
    %c0_i32_1 = arith.constant 0 : i32
    return %arg0, %c0_i32, %arg1, %c0_i32_0 : i32, i32, i32, i32
  }
  func.func @transform_1(%arg0: i32, %arg1: i32, %arg2: memref<16xf32, #tpu.memory_space<smem>>, %arg3: memref<4xf32, #tpu.memory_space<smem>>) -> (i32, i32, i32, i32) {
    %c0_i32 = arith.constant 0 : i32
    %c0_i32_0 = arith.constant 0 : i32
    %c0_i32_1 = arith.constant 0 : i32
    return %arg0, %c0_i32, %arg1, %c0_i32_0 : i32, i32, i32, i32
  }
}

</mosaic_0001>

<bundles_post_ra>
// kernel: tpu_custom_call.1
= control target key start
LH: loop header
LB: loop body
LE: loop exit
PB: predicated region body
PF: predicated region fallthrough
CT: control target
= control target key end

     0   :  { %s935_s0 = inlined_call_operand.hbm [shape: f32[16], index: 0, kind: input, shape index: {}]   ;;  %s936_s2 = inlined_call_operand.hbm [shape: f32[2,4,2,128], index: 2, kind: input, shape index: {}]   ;;  %s937_s3 = inlined_call_operand.hbm [shape: f32[2,4,2,128], index: 3, kind: output, shape index: {}]   ;;  %s938_s1 = inlined_call_operand.vmem [shape: f32[4], index: 1, kind: input, shape index: {}]  }
   0x1   :  { %s518_s14 = scalar_lea.hbm %s935_s0, 16 }
   0x2   :  { %p519_p0 = scmp.ne.s32.totalorder %s935_s0, %s518_s14  ;;  %p522_p1 = scmp.lt.u32.totalorder %s518_s14, %s935_s0 }
   0x4   :  { %p524_p2 = pnand %p522_p1, %p519_p0 }
   0x6   :  { %527 = shalt.err (!%p524_p2)  }
   0x7   :  { %s656_s19 = smov [#allocation3]   ;;  %s10_s24 = sshll.u32 %s938_s1, 4  ;;  %s11_s24 = int_to_ptr.vmem [resolvable:$true] %s10_s24 }
   0x8   :  { %9 = dma.hbm_to_smem %s935_s0, 16, %s656_s19, [#allocation2] }
   0x9   :  { %s528_s25 = scalar_lea.vmem %s11_s24, 16  ;;  %p533_p4 = scmp.lt.s32.totalorder %s11_s24, %s11_s24 }
   0xa   :  { %p529_p3 = scmp.ne.s32.totalorder %s11_s24, %s528_s25  ;;  %p534_p5 = scmp.lt.s32.totalorder %s528_s25, %s528_s25 }
   0xc   :  { %p535_p6 = por %p534_p5, %p533_p4 }
   0xe   :  { %p536_p7 = pnand %p535_p6, %p529_p3 }
  0x10   :  { %539 = shalt.err (!%p536_p7)  }
  0x11   :  { %s657_s26 = smov [#allocation4]  }
  0x12   :  { %13 = dma.vmem_to_smem %s11_s24, 16, %s657_s26, [#allocation2] }
  0x13   :  { %622 = dma.done.wait [#allocation2], 32 }
  0x14   :  { %623 = vsyncadd [#allocation2], 4294967264 }
  0x15   :  { %15 = sfence }
  0x16   :  { %16 = vsyncpa [#allocation6], 0 }
  0x17   :  { %18 = vsyncpa [#allocation6 + $0x1], 0 }
  0x18   :  { %19 = vsyncpa [#allocation7], 0 }
  0x19   :  { %21 = vsyncpa [#allocation7 + $0x1], 0  ;;  %s699_s0 = smov 0   ;;  %s701_s1 = smov 0  }
  0x1a   :  { %s703_s27 = smov 0   ;;  %s705_s28 = smov 0  }
  0x1b   :  { %s707_s29 = smov 0   ;;  %s709_s30 = smov 0  }
  0x1c LB: > { %s384_s4 = sadd.s32 4294967295, %s654_s30   ;;  %s385_s5 = sadd.s32 4294967294, %s654_s30   ;;  %s654_s30 = sphi %s709_s30, %s27_s30   ;;  %s650_s29 = sphi %s707_s29, %s953_s29   ;;  %s646_s28 = sphi %s705_s28, %s952_s28   ;;  %s642_s27 = sphi %s703_s27, %s951_s27   ;;  %s638_s1 = sphi %s701_s1, %s950_s1   ;;  %s634_s0 = sphi %s699_s0, %s949_s0  }
  0x1d   : > { %s39_s6 = sadd.s32 1, %s650_s29  ;;  %s48_s7 = sadd.s32 1, %s642_s27 }
  0x1e   : > { %p41_p8 = scmp.ge.s32.totalorder %s39_s6, 2  ;;  %p55_p9 = scmp.ne.s32.totalorder %s642_s27, %s638_s1 }
  0x1f   : > { %p56_p10 = scmp.eq.s32.totalorder %s654_s30, 0  ;;  %p61_p11 = scmp.ne.s32.totalorder %s638_s1, %s634_s0 }
  0x20   : > { %s955_s6 = smov (%p41_p8, %s39_s6), 0  ;;  %p62_p13 = scmp.eq.s32.totalorder %s384_s4, 0 }
  0x21   : > { %p740_p12 = por %p56_p10, %p55_p9  ;;  %s43_s9 = ssub.s32 %s650_s29, %s955_s6 }
  0x22   : > { %p87_p0 = scmp.eq.s32.totalorder %s384_s4, 1  ;;  %p46_p1 = scmp.eq.s32.totalorder %s43_s9, 0 }
  0x23   : > { %p746_p2 = por %p62_p13, %p61_p11  ;;  %p93_p4 = scmp.eq.s32.totalorder %s385_s5, 1 }
  0x24   : > { %p750_p3 = por %p87_p0, %p55_p9  ;;  %p446_p7 = scmp.lt.s32.totalorder %s654_s30, 2 }
  0x25   : > { %s755_s12 = scalar_select %p46_p1, %s642_s27, %s48_s7  }
  0x26   : > { %s942_s11 = scalar_select %p750_p3, 1, 0 }
  0x27   : > { %p757_p5 = por %p93_p4, %p61_p11  ;;  %s113_s14 = sand.u32 1, %s642_s27  }
  0x28   : > { %s388_s15 = sshll.u32 %s113_s14, 3  ;;  %s432_s16 = sshll.u32 %s650_s29, 7 }
  0x29   : > { %s943_s13 = scalar_select %p757_p5, 1, 0 }
  0x2a   : > { %s768_s19 = scalar_lea.hbm %s936_s2, %s432_s16  ;;  %s117_s20 = scalar_lea.vmem [#allocation5], %s388_s15 }
  0x2b   : > { %s125_s21 = sshll.u32 %s117_s20, 4  ;;  %p774_p8 = pnand %p446_p7, %p740_p12  ;;  %s770_s21 = int_to_ptr.vmem [resolvable:$true] %s125_s21 }
  0x2c   : > { %s779_s23 = scalar_lea.sflag [#allocation6], %s113_s14  ;;  %s540_s24 = scalar_lea.hbm %s768_s19, 128 }
  0x2d   : > { %p541_p10 = scmp.ne.s32.totalorder %s768_s19, %s540_s24  ;;  %p542_p11 = pneg %p774_p8 }
  0x2e   : > { %s545_s4 = scalar_lea.hbm %s936_s2, 256  ;;  %p546_p12 = scmp.lt.u32.totalorder %s768_s19, %s936_s2 }
  0x2f   : > { %p543_p13 = pnand %p542_p11, %p541_p10  ;;  %p547_p1 = scmp.lt.u32.totalorder %s545_s4, %s540_s24 }
  0x30   : > { %p549_p7 = scmp.lt.u32.totalorder %s540_s24, %s768_s19 }
  0x31   : > { %p544_p0 = pneg %p543_p13  ;;  %p548_p4 = por %p547_p1, %p546_p12 }
  0x33   : > { %p550_p6 = por %p549_p7, %p548_p4 }
  0x35   : > { %p551_p9 = pnand %p550_p6, %p544_p0 }
  0x37   : > { %554 = shalt.err (!%p551_p9)
}
  0x38   : > { %s555_s8 = scalar_lea.vmem %s770_s21, 128  ;;  %s658_s9 = smov [#allocation5]  }
  0x39   : > { %p556_p10 = scmp.ne.s32.totalorder %s770_s21, %s555_s8  ;;  %s560_s14 = sshll.u32 %s658_s9, 4  ;;  %s561_s14 = int_to_ptr.vmem [resolvable:$false] %s560_s14 }
  0x3a   : > { %s562_s15 = scalar_lea.vmem %s561_s14, 256  ;;  %p563_p3 = scmp.lt.s32.totalorder %s770_s21, %s561_s14 }
  0x3b   : > { %p558_p13 = pnand %p556_p10, %p542_p11  ;;  %p564_p12 = scmp.lt.s32.totalorder %s562_s15, %s555_s8 }
  0x3d   : > { %p559_p5 = pneg %p558_p13  ;;  %p565_p1 = por %p564_p12, %p563_p3 }
  0x3f   : > { %p566_p4 = pnand %p565_p1, %p559_p5 }
  0x41   : > { %569 = shalt.err (!%p566_p4)
}
  0x42   : > { %s659_s16 = smov 32   ;;  %s660_s17 = smov 2  }
  0x43   : > { %441 = dma.hbm_to_vmem [thread:$0]  (!%p774_p8), %s768_s19, 128, %s770_s21, %s779_s23, %s659_s16, %s659_s16, %s660_s17  }
  0x44   : > { %p133_p6 = scmp.lt.s32.totalorder %s654_s30, 3  ;;  %p945_p9 = scmp.ge.s32.totalorder %s654_s30, 1 }
  0x46   : > { %p134_p11 = pnand %p945_p9, %p133_p6 }
  0x47   : > { %s811_s18 = sand.u32 (!%p134_p11), 1, %s638_s1  }
  0x48   : > { %137 = sbr.rel (%p134_p11) target bundleno = 156 (0x9c), region = 24  ;;  %s392_s20 = sshll.u32 (!%p134_p11), %s811_s18, 3 }
  0x49   : > { %s140_s24 = scalar_lea.sflag (!%p134_p11), [#allocation6], %s811_s18  ;;  %s817_s25 = scalar_lea.vmem (!%p134_p11), [#allocation5], %s392_s20 }
  0x4f   : > { %625 = dma.done.wait (%p746_p2), %s140_s24, 128  }
  0x50   : > { %627 = vsyncadd (%p746_p2), %s140_s24, 4294967168  ;;  %s163_s19 = sld [smem:[#allocation3]]  ;;  %s395_s21 = sld [smem:[#allocation3 + $0x1]]  ;;  %v830_v0 = vld [vmem:[%s817_s25] sm:$0x3] }
  0x51   : > { %s397_s22 = sld [smem:[#allocation3 + $0x2]]  ;;  %s399_s23 = sld [smem:[#allocation3 + $0x3]]  ;;  %v394_v2 = vld [vmem:[%s817_s25 + $0x2] sm:$0x3]  ;;  %v396_v6 = vld [vmem:[%s817_s25 + $0x4] sm:$0x3] }
  0x52   : > { %s823_s26 = sld [smem:[#allocation4]]  ;;  %s400_s4 = sld [smem:[#allocation3 + $0x4]]  ;;  %v398_v8 = vld [vmem:[%s817_s25 + $0x6] sm:$0x3]  ;;  %v194_v11 = vld [vmem:[%s817_s25] sm:$0x3] }
  0x53   : > { %s402_s5 = sld [smem:[#allocation3 + $0x5]]  ;;  %s404_s7 = sld [smem:[#allocation3 + $0x6]]  ;;  %v842_v12 = vld [vmem:[%s817_s25 + $0x2] sm:$0x3]  ;;  %v403_v13 = vld [vmem:[%s817_s25 + $0x4] sm:$0x3] }
  0x54   : > { %s825_s8 = sld [smem:[#allocation3 + $0x7]]  ;;  %s827_s9 = sld [smem:[#allocation4 + $0x1]]  ;;  %v405_v17 = vld [vmem:[%s817_s25 + $0x6] sm:$0x3]  ;;  %v224_v21 = vld [vmem:[%s817_s25] sm:$0x3] }
  0x55   : > { %s833_s10 = sld [smem:[#allocation3 + $0x8]]  ;;  %s838_s14 = sld [smem:[#allocation3 + $0x9]]  ;;  %v410_v26 = vld [vmem:[%s817_s25 + $0x2] sm:$0x3]  ;;  %v860_v35 = vld [vmem:[%s817_s25 + $0x4] sm:$0x3] }
  0x56   : > { %v164_v1 = vstv %s163_s19  ;;  %v169_v3 = vstv %s395_s21  ;;  %s413_s15 = sld [smem:[#allocation3 + $0xa]]  ;;  %s415_s16 = sld [smem:[#allocation3 + $0xb]]  ;;  %v414_v38 = vld [vmem:[%s817_s25 + $0x6] sm:$0x3]  ;;  %v254_v42 = vld [vmem:[%s817_s25] sm:$0x3] }
  0x57   : > { %v165_v4 = vmul.f32 %v164_v1, %v830_v0  ;;  %v170_v5 = vmul.f32 %v394_v2, %v169_v3  ;;  %v175_v7 = vstv %s397_s22  ;;  %v181_v9 = vstv %s399_s23  ;;  %s850_s17 = sld [smem:[#allocation4 + $0x2]]  ;;  %s418_s24 = sld [smem:[#allocation3 + $0xc]]  ;;  %v419_v47 = vld [vmem:[%s817_s25 + $0x2] sm:$0x3]  ;;  %v421_v51 = vld [vmem:[%s817_s25 + $0x4] sm:$0x3] }
  0x58   : > { %v176_v10 = vmul.f32 %v396_v6, %v175_v7  ;;  %v182_v15 = vmul.f32 %v398_v8, %v181_v9  ;;  %v196_v16 = vstv %s400_s4  ;;  %v185_v27 = vstv %s823_s26  ;;  %s854_s19 = sld [smem:[#allocation3 + $0xd]]  ;;  %s857_s21 = sld [smem:[#allocation3 + $0xe]]  ;;  %v423_v56 = vld [vmem:[%s817_s25 + $0x6] sm:$0x3] }
  0x59   : > { %v171_v14 = vadd.f32 %v170_v5, %v165_v4  ;;  %v197_v18 = vmul.f32 %v196_v16, %v194_v11  ;;  %v200_v19 = vstv %s402_s5  ;;  %v205_v20 = vstv %s404_s7  ;;  %s862_s22 = sld [smem:[#allocation3 + $0xf]]  ;;  %s425_s23 = sld [smem:[#allocation4 + $0x3]] }
  0x5a   : > { %v201_v23 = vmul.f32 %v842_v12, %v200_v19  ;;  %v206_v24 = vmul.f32 %v403_v13, %v205_v20  ;;  %v210_v25 = vstv %s825_s8  ;;  %v214_v39 = vstv %s827_s9  ;;  %s161_s25 = scalar_lea.vmem [#allocation8], %s392_s20  ;;  %s433_s4 = sshll.u32 %s646_s28, 7 }
  0x5b   : > { %v177_v22 = vadd.f32 %v176_v10, %v171_v14  ;;  %v211_v28 = vmul.f32 %v405_v17, %v210_v25  ;;  %v226_v29 = vstv %s833_s10  ;;  %v230_v33 = vstv %s838_s14  ;;  %s299_s26 = sshll.u32 %s161_s25, 4  ;;  %s886_s7 = scalar_lea.hbm %s937_s3, %s433_s4  ;;  %s881_s26 = int_to_ptr.vmem [resolvable:$true] %s299_s26 }
  0x5c   : > { %v202_v31 = vadd.f32 %v201_v23, %v197_v18  ;;  %v227_v32 = vmul.f32 %v226_v29, %v224_v21  ;;  %v231_v34 = vmul.f32 %v410_v26, %v230_v33  ;;  %v235_v41 = vstv %s413_s15  ;;  %s285_s8 = scalar_lea.sflag [#allocation7], %s811_s18  ;;  %s570_s9 = scalar_lea.vmem %s881_s26, 128 }
  0x5d   : > { %v183_v30 = vadd.f32 %v182_v15, %v177_v22  ;;  %v236_v45 = vmul.f32 %v860_v35, %v235_v41  ;;  %v240_v46 = vstv %s415_s16  ;;  %v256_v49 = vstv %s418_s24  ;;  %p571_p2 = scmp.ne.s32.totalorder %s881_s26, %s570_s9  ;;  %p946_p3 = scmp.ne.s32.totalorder %s942_s11, 0 }
  0x5e   : > { %v207_v37 = vadd.f32 %v206_v24, %v202_v31  ;;  %v232_v40 = vadd.f32 %v231_v34, %v227_v32  ;;  %v241_v48 = vmul.f32 %v414_v38, %v240_v46  ;;  %v260_v50 = vstv %s854_s19  ;;  %s661_s28 = smov [#allocation8]  }
  0x5f   : > { %v186_v36 = vadd.f32 %v185_v27, %v183_v30  ;;  %v257_v55 = vmul.f32 %v256_v49, %v254_v42  ;;  %v244_v57 = vstv %s850_s17  ;;  %v261_v58 = vmul.f32 %v419_v47, %v260_v50  ;;  %p572_p5 = pnand %p571_p2, %p946_p3  ;;  %s574_s10 = sshll.u32 %s661_s28, 4  ;;  %s575_s10 = int_to_ptr.vmem [resolvable:$false] %s574_s10 }
  0x60   : > { %v212_v44 = vadd.f32 %v211_v28, %v207_v37  ;;  %v237_v54 = vadd.f32 %v236_v45, %v232_v40  ;;  %v265_v59 = vstv %s857_s21  ;;  %v270_v60 = vstv %s862_s22  ;;  %s576_s14 = scalar_lea.vmem %s575_s10, 256  ;;  %p577_p0 = scmp.lt.s32.totalorder %s881_s26, %s575_s10 }
  0x61   : > { %v187_v43 = vsub.f32 0.0, %v186_v36  ;;  %v266_v63 = vmul.f32 %v421_v51, %v265_v59  ;;  %v262_v1 = vadd.f32 %v261_v58, %v257_v55  ;;  %v271_v2 = vmul.f32 %v423_v56, %v270_v60  ;;  %p573_p8 = pneg %p572_p5  ;;  %p578_p7 = scmp.lt.s32.totalorder %s576_s14, %s570_s9 }
  0x62   : > { %v215_v53 = vadd.f32 %v214_v39, %v212_v44  ;;  %v242_v62 = vadd.f32 %v241_v48, %v237_v54  ;;  %v274_v7 = vstv %s425_s23 }
  0x63   : > { %v188_v52 = vmul.f32 1.442695, %v187_v43  ;;  %v267_v5 = vadd.f32 %v266_v63, %v262_v1  ;;  %p579_p10 = por %p578_p7, %p577_p0 }
  0x64   : > { %v216_v61 = vsub.f32 0.0, %v215_v53  ;;  %v245_v4 = vadd.f32 %v244_v57, %v242_v62 }
  0x65   : > { %502 = vpow2.f32 %v188_v52  ;;  %v272_v8 = vadd.f32 %v271_v2, %v267_v5  ;;  %p580_p13 = pnand %p579_p10, %p573_p8 }
  0x66   : > { %v217_v3 = vmul.f32 1.442695, %v216_v61  ;;  %v246_v6 = vsub.f32 0.0, %v245_v4 }
  0x67   : > { %v275_v10 = vadd.f32 %v274_v7, %v272_v8 }
  0x68   : > { %504 = vpow2.f32 %v217_v3  ;;  %v247_v9 = vmul.f32 1.442695, %v246_v6 }
  0x69   : > { %v276_v11 = vsub.f32 0.0, %v275_v10 }
  0x6a   : > { %506 = vpow2.f32 %v247_v9 }
  0x6b   : > { %v277_v15 = vmul.f32 1.442695, %v276_v11 }
  0x6f   : > { %v503_v13 = vpop.eup %502 }
  0x70   : > { %v190_v14 = vadd.f32 1.0, %v503_v13 }
  0x72   : > { %508 = vrcp.f32 %v190_v14  ;;  %v505_v16 = vpop.eup %504 }
  0x73   : > { %510 = vpow2.f32 %v277_v15  ;;  %v219_v17 = vadd.f32 1.0, %v505_v16 }
  0x74   : > { %v507_v18 = vpop.eup %506 }
  0x75   : > { %512 = vrcp.f32 %v219_v17  ;;  %v249_v19 = vadd.f32 1.0, %v507_v18 }
  0x77   : > { %514 = vrcp.f32 %v249_v19 }
  0x7c   : > { %v509_v20 = vpop.eup %508 }
  0x7d   : > { %v511_v21 = vpop.eup %510  ;;  %v192_v22 = vmul.f32 %v509_v20, %v830_v0 }
  0x7e   : > { %v279_v23 = vadd.f32 1.0, %v511_v21 }
  0x7f   : > { %193 = vst [vmem:[%s161_s25] sm:$0x3] %v192_v22  ;;  %v513_v24 = vpop.eup %512 }
  0x80   : > { %516 = vrcp.f32 %v279_v23  ;;  %v221_v25 = vmul.f32 %v513_v24, %v842_v12 }
  0x81   : > { %v515_v26 = vpop.eup %514 }
  0x82   : > { %408 = vst [vmem:[%s161_s25 + $0x2] sm:$0x3] %v221_v25  ;;  %v251_v27 = vmul.f32 %v515_v26, %v860_v35 }
  0x84   : > { %417 = vst [vmem:[%s161_s25 + $0x4] sm:$0x3] %v251_v27 }
  0x8a   : > { %v517_v28 = vpop.eup %516 }
  0x8b   : > { %v281_v0 = vmul.f32 %v517_v28, %v423_v56 }
  0x8d   : > { %426 = vst [vmem:[%s161_s25 + $0x6] sm:$0x3] %v281_v0 }
  0x8e   : > { %583 = shalt.err (!%p580_p13)
}
  0x8f   : > { %s584_s15 = scalar_lea.hbm %s886_s7, 128  ;;  %s588_s24 = scalar_lea.hbm %s937_s3, 256 }
  0x90   : > { %p585_p12 = scmp.ne.s32.totalorder %s886_s7, %s584_s15  ;;  %p589_p6 = scmp.lt.u32.totalorder %s886_s7, %s937_s3 }
  0x91   : > { %p590_p9 = scmp.lt.u32.totalorder %s588_s24, %s584_s15  ;;  %p592_p2 = scmp.lt.u32.totalorder %s584_s15, %s886_s7 }
  0x92   : > { %p586_p1 = pnand %p585_p12, %p946_p3 }
  0x93   : > { %p591_p11 = por %p590_p9, %p589_p6 }
  0x94   : > { %p587_p4 = pneg %p586_p1 }
  0x95   : > { %p593_p5 = por %p592_p2, %p591_p11 }
  0x97   : > { %p594_p8 = pnand %p593_p5, %p587_p4 }
  0x99   : > { %597 = shalt.err (!%p594_p8)
}
  0x9a   : > { %s662_s22 = smov 32   ;;  %s663_s23 = smov 2  }
  0x9b   : > { %436 = dma.vmem_to_hbm [thread:$0]  (%p946_p3), %s881_s26, 128, %s886_s7, %s285_s8, %s662_s22, %s662_s22, %s663_s23  }
  0x9c PF: > { %s314_s25 = sand.u32 1, %s634_s0   ;;  %p947_p0 = scmp.ne.s32.totalorder %s943_s13, 0 }
  0x9d   : > { %p948_p7 = scmp.ge.s32.totalorder %s654_s30, 2  ;;  %s315_s4 = scalar_lea.sflag [#allocation7], %s314_s25 }
  0x9f   : > { %p443_p10 = pnand %p948_p7, %p947_p0 }
  0xa1   : > { %629 = dma.done.wait (!%p443_p10), %s315_s4, 128  }
  0xa2   : > { %631 = vsyncadd (!%p443_p10), %s315_s4, 4294967168  ;;  %s27_s30 = sadd.s32 1, %s654_s30   ;;  %s949_s0 = smov %s638_s1 }
  0xa3   : > { %p24_p13 = scmp.ge.s32.totalorder %s27_s30, 4   ;;  %s950_s1 = smov %s642_s27 }
  0xa4   : > { %s951_s27 = smov %s755_s12  ;;  %s952_s28 = smov %s650_s29 }
  0xa5   : > { %s953_s29 = smov %s955_s6  ;;  %26 = sbr.rel (!%p24_p13) target bundleno = 28 (0x1c), region = 75 }
  0xac   :  { %320 = vsyncpa [#allocation6], 1 }
  0xad   :  { %322 = vsyncpa [#allocation6 + $0x1], 1 }
  0xae   :  { %323 = vsyncpa [#allocation7], 1 }
  0xaf   :  { %325 = vsyncpa [#allocation7 + $0x1], 1 }

</bundles_post_ra>
